<compile_context>
chip_gen: v6e
topology: v6e:2x2x1
jax: 0.10.0
libtpu: 0.0.40
codegen_flags: <defaults>
</compile_context>

<pallas_src>
import functools
from typing import NamedTuple

import jax
import jax.numpy as jnp
from jax.experimental import pallas as pl
from jax.experimental.pallas import tpu as pltpu


def _round_up(x: int, m: int) -> int:
    return ((x + m - 1) // m) * m


@functools.lru_cache(maxsize=None)
def _vmem_budget_bytes() -> int:
    """Per-step VMEM budget: 75% of physical VMEM (v7x-safe 48 MiB fallback)."""
    cap = 64 * 1024 * 1024  # safe default: v7x physical VMEM per TensorCore
    try:
        info = pltpu.get_tpu_info()
        cap = int(getattr(info, "vmem_capacity_bytes", cap))
    except Exception:
        pass
    return (cap * 3) // 4


def _mlp_footprint(tm: int, d_in: int, th: int, tn: int,
                   dx: int, dw: int, do: int) -> int:
    """Approximate per-step VMEM footprint in bytes (streams double-buffered)."""
    return (2 * tm * d_in * dx        # x tile
            + 2 * d_in * th * dw      # w1 chunk
            + 2 * th * dw             # b1 chunk
            + 2 * th * tn * dw        # w2 chunk
            + 2 * tn * dw             # b2 tile
            + 2 * tm * tn * do        # output tile
            + tm * th * 4             # fc1 activation (f32)
            + tm * tn * 4)            # f32 accumulator scratch (worst case)


def _pick_tm(batch: int, tm_cap: int, align: int) -> int:
    """Largest batch tile with low zero-row padding waste."""
    b_aligned = _round_up(batch, align)
    if b_aligned <= tm_cap:
        return b_aligned
    cands = [t for t in (512, 256, 128, 64, 32, 16) if align <= t <= tm_cap] or [align]
    for tm in cands:                                  # <= ~12.5% padding waste
        if (_round_up(batch, tm) - batch) * 8 <= batch:
            return tm
    return min(cands, key=lambda t: (_round_up(batch, t) - batch, -t))


class MLPTiling(NamedTuple):
    out_dim: int      # un-padded output dim (for final slice)
    th: int           # hidden-dim chunk
    tn: int           # output-dim tile
    tm_cap: int       # max batch tile
    vmem_budget: int  # bytes


def prepare_mlp_params(w1, b1, w2, b2, *, compute_dtype=None,
                       tm_cap: int = 256, tn_max: int = 2048):
    """One-time weight prep: pad to lane-dense tiles, optional cast, pick tiling.

    Call this once per set of weights; `mlp_forward` then only pads `x` per call.
    Zero padding of H/O contributes exactly 0 to the result.
    """
    budget = _vmem_budget_bytes()
    cdt = jnp.dtype(compute_dtype) if compute_dtype is not None else jnp.dtype(w1.dtype)
    dw = cdt.itemsize
    d_in, hidden = w1.shape
    out_dim = w2.shape[1]

    # Lane-dense output: O padded to a multiple of 128; tile O only when large.
    o_pad = _round_up(out_dim, 128)
    tn = o_pad if o_pad <= tn_max else tn_max
    o_pad = _round_up(o_pad, tn)

    # Prefer a single hidden chunk (weights stay VMEM-resident across batch
    # tiles, no accumulator RMW); only chunk H when the footprint won't fit.
    # TODO(synk): D_in is kept untiled; extremely large D_in would need a
    # third (fc1-reduction) axis not implemented here.
    th = _round_up(hidden, 128)
    while th > 128 and _mlp_footprint(tm_cap, d_in, th, tn, 4, dw, 4) > budget:
        th = _round_up(th // 2, 128)
    h_pad = _round_up(hidden, th)

    w1p = jnp.pad(w1, ((0, 0), (0, h_pad - hidden))).astype(cdt)
    b1p = jnp.pad(b1.reshape(1, -1), ((0, 0), (0, h_pad - hidden))).astype(cdt)
    w2p = jnp.pad(w2, ((0, h_pad - hidden), (0, o_pad - out_dim))).astype(cdt)
    b2p = jnp.pad(b2.reshape(1, -1), ((0, 0), (0, o_pad - out_dim))).astype(cdt)

    cfg = MLPTiling(out_dim=out_dim, th=th, tn=tn, tm_cap=tm_cap, vmem_budget=budget)
    return (w1p, b1p, w2p, b2p), cfg


def _mlp_kernel_single(x_ref, w1_ref, b1_ref, w2_ref, b2_ref, o_ref):
    """Fast path: H fits in one chunk -> no accumulator scratch, direct store."""
    h = jnp.dot(x_ref[...], w1_ref[...], preferred_element_type=jnp.float32)
    h = jnp.maximum(h + b1_ref[...], 0.0)              # bias + ReLU in f32 (VPU)
    y = jnp.dot(h.astype(w2_ref.dtype), w2_ref[...],
                preferred_element_type=jnp.float32)
    o_ref[...] = (y + b2_ref[...]).astype(o_ref.dtype)


def _mlp_kernel_chunked(x_ref, w1_ref, b1_ref, w2_ref, b2_ref, o_ref, acc_ref):
    """General path: hidden dim chunked (grid axis 2 = reduction, 'arbitrary')."""
    k = pl.program_id(2)

    @pl.when(k == 0)
    def _init():
        acc_ref[...] = jnp.zeros_like(acc_ref)

    h = jnp.dot(x_ref[...], w1_ref[...], preferred_element_type=jnp.float32)
    h = jnp.maximum(h + b1_ref[...], 0.0)
    acc_ref[...] += jnp.dot(h.astype(w2_ref.dtype), w2_ref[...],
                            preferred_element_type=jnp.float32)

    @pl.when(k == pl.num_programs(2) - 1)
    def _finalize():
        o_ref[...] = (acc_ref[...] + b2_ref[...]).astype(o_ref.dtype)


@functools.partial(jax.jit, static_argnames=("cfg",))
def mlp_forward(x, params, cfg: MLPTiling):
    w1p, b1p, w2p, b2p = params
    batch, d_in = x.shape
    h_pad = w1p.shape[1]
    o_pad = w2p.shape[1]
    th, tn = cfg.th, cfg.tn

    dw = jnp.dtype(w1p.dtype).itemsize
    dx = dw                                   # x is cast to the compute dtype
    do = jnp.dtype(x.dtype).itemsize

    # Batch tile: packed-sublane aligned, low padding waste, footprint-checked.
    row_align = 8 if dx >= 4 else (16 if dx == 2 else 32)
    tm = _pick_tm(batch, cfg.tm_cap, row_align)
    while tm > row_align and _mlp_footprint(tm, d_in, th, tn, dx, dw, do) > cfg.vmem_budget:
        tm = max(row_align, _round_up(tm // 2, row_align))

    b_pad = _round_up(batch, tm)
    xp = x
    if b_pad != batch:
        xp = jnp.pad(xp, ((0, b_pad - batch), (0, 0)))
    if xp.dtype != w1p.dtype:
        xp = xp.astype(w1p.dtype)

    nb, nn, nk = b_pad // tm, o_pad // tn, h_pad // th

    cost = pl.CostEstimate(
        flops=2 * b_pad * d_in * h_pad + 2 * b_pad * h_pad * o_pad,
        transcendentals=0,
        bytes_accessed=(xp.size * dx + w1p.size * dw + b1p.size * dw
                        + w2p.size * dw + b2p.size * dw + b_pad * o_pad * do),
    )
    compiler_params = pltpu.CompilerParams(
        dimension_semantics=(("parallel", "parallel") if nk == 1
                             else ("parallel", "parallel", "arbitrary")),
        vmem_limit_bytes=cfg.vmem_budget,
    )
    out_shape = jax.ShapeDtypeStruct((b_pad, o_pad), x.dtype)

    if nk == 1:
        # Weights fully VMEM-resident across batch tiles; no accumulator.
        grid_spec = pltpu.PrefetchScalarGridSpec(
            num_scalar_prefetch=0,
            grid=(nb, nn),
            in_specs=[
                pl.BlockSpec((tm, d_in), lambda i, j: (i, 0)),   # x: streams with batch
                pl.BlockSpec((d_in, th), lambda i, j: (0, 0)),   # w1: resident
                pl.BlockSpec((1, th), lambda i, j: (0, 0)),      # b1: resident
                pl.BlockSpec((th, tn), lambda i, j: (0, j)),     # w2: streams with O tile
                pl.BlockSpec((1, tn), lambda i, j: (0, j)),      # b2
            ],
            out_specs=pl.BlockSpec((tm, tn), lambda i, j: (i, j)),
        )
        kernel = _mlp_kernel_single
    else:
        grid_spec = pltpu.PrefetchScalarGridSpec(
            num_scalar_prefetch=0,
            grid=(nb, nn, nk),
            in_specs=[
                pl.BlockSpec((tm, d_in), lambda i, j, k: (i, 0)),
                pl.BlockSpec((d_in, th), lambda i, j, k: (0, k)),
                pl.BlockSpec((1, th), lambda i, j, k: (0, k)),
                pl.BlockSpec((th, tn), lambda i, j, k: (k, j)),
                pl.BlockSpec((1, tn), lambda i, j, k: (0, j)),
            ],
            out_specs=pl.BlockSpec((tm, tn), lambda i, j, k: (i, j)),
            scratch_shapes=[pltpu.VMEM((tm, tn), jnp.float32)],
        )
        kernel = _mlp_kernel_chunked

    out = pl.pallas_call(
        kernel,
        out_shape=out_shape,
        grid_spec=grid_spec,
        compiler_params=compiler_params,
        cost_estimate=cost,
    )(xp, w1p, b1p, w2p, b2p)

    return out[:batch, :cfg.out_dim]


if __name__ == "__main__":
    # Small shapes consistent with the module: input_dim=16, hidden_dim=32, output_dim=1
    B, D_in, H, O = 8, 16, 32, 1
    key = jax.random.PRNGKey(0)
    kx, kw1, kb1, kw2, kb2 = jax.random.split(key, 5)

    # PyTorch-Linear-style uniform init (weights stored as (in, out)).
    lim1 = 1.0 / jnp.sqrt(D_in)
    lim2 = 1.0 / jnp.sqrt(H)
    w1 = jax.random.uniform(kw1, (D_in, H), jnp.float32, -lim1, lim1)
    b1 = jax.random.uniform(kb1, (H,), jnp.float32, -lim1, lim1)
    w2 = jax.random.uniform(kw2, (H, O), jnp.float32, -lim2, lim2)
    b2 = jax.random.uniform(kb2, (O,), jnp.float32, -lim2, lim2)

    x = jax.random.normal(kx, (B, D_in), jnp.float32)

    # One-time weight prep (padding + tiling choice); per-call work only pads x.
    # For v6e/v7x MXU speed, pass compute_dtype=jnp.bfloat16 (tolerance ~1e-2).
    params, cfg = prepare_mlp_params(w1, b1, w2, b2)

    out = mlp_forward(x, params, cfg)
    out = jax.block_until_ready(out)

    # Pure-JAX reference check
    ref = jnp.maximum(x @ w1 + b1[None, :], 0.0) @ w2 + b2[None, :]
    assert out.shape == (B, O)
    assert jnp.allclose(out, ref, atol=1e-5, rtol=1e-5)

    print("KERNEL_OK")
</pallas_src>

<mosaic_0001>
module attributes {stable_mosaic.version = 11 : i64} {
  func.func @_mlp_kernel_single(%arg0: i32, %arg1: i32, %arg2: memref<8x16xf32, #tpu.memory_space<vmem>>, %arg3: memref<16x128xf32, #tpu.memory_space<vmem>>, %arg4: memref<1x128xf32, #tpu.memory_space<vmem>>, %arg5: memref<128x128xf32, #tpu.memory_space<vmem>>, %arg6: memref<1x128xf32, #tpu.memory_space<vmem>>, %arg7: memref<8x128xf32, #tpu.memory_space<vmem>>) attributes {dimension_semantics = [#tpu.dimension_semantics<parallel>, #tpu.dimension_semantics<parallel>], iteration_bounds = array<i64: 1, 1>, scalar_prefetch = 0 : i64, scratch_operands = 0 : i64, tpu.core_type = #tpu.core_type<tc>, window_params = [{transform_indices = @transform_0, window_bounds = array<i64: 8, 16>}, {pipeline_mode = #tpu.pipeline_mode<synchronous>, transform_indices = @transform_1, window_bounds = array<i64: 16, 128>}, {pipeline_mode = #tpu.pipeline_mode<synchronous>, transform_indices = @transform_2, window_bounds = array<i64: 1, 128>}, {transform_indices = @transform_3, window_bounds = array<i64: 128, 128>}, {transform_indices = @transform_4, window_bounds = array<i64: 1, 128>}, {transform_indices = @transform_5, window_bounds = array<i64: 8, 128>}]} {
    %c0 = arith.constant 0 : index
    %c0_0 = arith.constant 0 : index
    %0 = vector.load %arg2[%c0, %c0_0] : memref<8x16xf32, #tpu.memory_space<vmem>>, vector<8x16xf32>
    %c0_1 = arith.constant 0 : index
    %c0_2 = arith.constant 0 : index
    %1 = vector.load %arg3[%c0_1, %c0_2] : memref<16x128xf32, #tpu.memory_space<vmem>>, vector<16x128xf32>
    %cst = arith.constant dense<0.000000e+00> : vector<8x128xf32>
    %2 = tpu.matmul %0, %1, %cst {dimension_numbers = #tpu.dot_dimension_numbers<[1], [0], [0], [1], [0, 0, 1, 1], [], []>} : vector<8x16xf32>, vector<16x128xf32>, vector<8x128xf32> -> vector<8x128xf32>
    %c0_3 = arith.constant 0 : index
    %c0_4 = arith.constant 0 : index
    %3 = vector.load %arg4[%c0_3, %c0_4] : memref<1x128xf32, #tpu.memory_space<vmem>>, vector<1x128xf32>
    %4 = vector.broadcast %3 : vector<1x128xf32> to vector<8x128xf32>
    %5 = arith.addf %2, %4 : vector<8x128xf32>
    %cst_5 = arith.constant 0.000000e+00 : f32
    %6 = vector.broadcast %cst_5 : f32 to vector<8x128xf32>
    %7 = arith.maximumf %5, %6 : vector<8x128xf32>
    %c0_6 = arith.constant 0 : index
    %c0_7 = arith.constant 0 : index
    %8 = vector.load %arg5[%c0_6, %c0_7] : memref<128x128xf32, #tpu.memory_space<vmem>>, vector<128x128xf32>
    %cst_8 = arith.constant dense<0.000000e+00> : vector<8x128xf32>
    %9 = tpu.matmul %7, %8, %cst_8 {dimension_numbers = #tpu.dot_dimension_numbers<[1], [0], [0], [1], [0, 0, 1, 1], [], []>} : vector<8x128xf32>, vector<128x128xf32>, vector<8x128xf32> -> vector<8x128xf32>
    %c0_9 = arith.constant 0 : index
    %c0_10 = arith.constant 0 : index
    %10 = vector.load %arg6[%c0_9, %c0_10] : memref<1x128xf32, #tpu.memory_space<vmem>>, vector<1x128xf32>
    %11 = vector.broadcast %10 : vector<1x128xf32> to vector<8x128xf32>
    %12 = arith.addf %9, %11 : vector<8x128xf32>
    %c0_11 = arith.constant 0 : index
    %c0_12 = arith.constant 0 : index
    %13 = vector.load %arg7[%c0_11, %c0_12] : memref<8x128xf32, #tpu.memory_space<vmem>>, vector<8x128xf32>
    tpu.vector_store %arg7[%c0_11, %c0_12], %12 {strides = array<i32>} : memref<8x128xf32, #tpu.memory_space<vmem>>, vector<8x128xf32>,
    return
  }
  func.func @transform_0(%arg0: i32, %arg1: i32) -> (i32, i32) {
    %c0_i32 = arith.constant 0 : i32
    %c0_i32_0 = arith.constant 0 : i32
    return %arg0, %c0_i32 : i32, i32
  }
  func.func @transform_1(%arg0: i32, %arg1: i32) -> (i32, i32) {
    %c0_i32 = arith.constant 0 : i32
    %c0_i32_0 = arith.constant 0 : i32
    %c0_i32_1 = arith.constant 0 : i32
    return %c0_i32, %c0_i32_0 : i32, i32
  }
  func.func @transform_2(%arg0: i32, %arg1: i32) -> (i32, i32) {
    %c0_i32 = arith.constant 0 : i32
    %c0_i32_0 = arith.constant 0 : i32
    %c0_i32_1 = arith.constant 0 : i32
    return %c0_i32, %c0_i32_0 : i32, i32
  }
  func.func @transform_3(%arg0: i32, %arg1: i32) -> (i32, i32) {
    %c0_i32 = arith.constant 0 : i32
    %c0_i32_0 = arith.constant 0 : i32
    return %c0_i32, %arg1 : i32, i32
  }
  func.func @transform_4(%arg0: i32, %arg1: i32) -> (i32, i32) {
    %c0_i32 = arith.constant 0 : i32
    %c0_i32_0 = arith.constant 0 : i32
    return %c0_i32, %arg1 : i32, i32
  }
  func.func @transform_5(%arg0: i32, %arg1: i32) -> (i32, i32) {
    %c0_i32 = arith.constant 0 : i32
    return %arg0, %arg1 : i32, i32
  }
}

</mosaic_0001>

<bundles_post_ra>
// kernel: mlp_forward.1
= control target key start
LH: loop header
LB: loop body
LE: loop exit
PB: predicated region body
PF: predicated region fallthrough
CT: control target
= control target key end

     0   :  { %10 = vsyncpa [#allocation3], 0  ;;  %s435_s0 = inlined_call_operand.hbm [shape: f32[8,16], index: 0, kind: input, shape index: {}]   ;;  %s436_s1 = inlined_call_operand.hbm [shape: f32[16,128], index: 1, kind: input, shape index: {}]   ;;  %s437_s2 = inlined_call_operand.vmem [shape: f32[1,128], index: 2, kind: input, shape index: {}]   ;;  %s438_s3 = inlined_call_operand.hbm [shape: f32[128,128], index: 3, kind: input, shape index: {}]   ;;  %s439_s4 = inlined_call_operand.vmem [shape: f32[1,128], index: 4, kind: input, shape index: {}]   ;;  %s440_s5 = inlined_call_operand.vmem [shape: f32[8,128], index: 5, kind: output, shape index: {}]  }
   0x1   :  { %11 = vsyncpa [#allocation5], 0  ;;  %s380_s18 = smov [#allocation4]  }
   0x2   :  { %s27_s19 = sshll.u32 %s380_s18, 4  ;;  %s28_s19 = int_to_ptr.vmem [resolvable:$true] %s27_s19 }
   0x3   :  { %s324_s20 = scalar_lea.vmem %s28_s19, 256  ;;  %p329_p1 = scmp.lt.s32.totalorder %s28_s19, %s28_s19 }
   0x4   :  { %p325_p0 = scmp.ne.s32.totalorder %s28_s19, %s324_s20  ;;  %p330_p2 = scmp.lt.s32.totalorder %s324_s20, %s324_s20 }
   0x6   :  { %p331_p3 = por %p330_p2, %p329_p1 }
   0x8   :  { %p332_p4 = pnand %p331_p3, %p325_p0 }
   0xa   :  { %335 = shalt.err (!%p332_p4)
}
   0xb   :  { %s381_s21 = smov 128   ;;  %s382_s22 = smov 8  }
   0xc   :  { %33 = dma.hbm_to_vmem [thread:$0]  %s436_s1, 256, %s28_s19, [#allocation5], %s381_s21, %s381_s21, %s382_s22  }
   0xd   :  { %s383_s25 = smov [#allocation2]   ;;  %s384_s27 = smov [#allocation6]  }
   0xe   :  { %s18_s26 = sshll.u32 %s383_s25, 4  ;;  %s41_s28 = sshll.u32 %s384_s27, 4  ;;  %s19_s26 = int_to_ptr.vmem [resolvable:$true] %s18_s26  ;;  %s42_s28 = int_to_ptr.vmem [resolvable:$true] %s41_s28 }
   0xf   :  { %s344_s29 = scalar_lea.vmem %s19_s26, 128  ;;  %p349_p6 = scmp.lt.s32.totalorder %s19_s26, %s19_s26 }
  0x10   :  { %p345_p5 = scmp.ne.s32.totalorder %s19_s26, %s344_s29  ;;  %p350_p7 = scmp.lt.s32.totalorder %s344_s29, %s344_s29 }
  0x12   :  { %p351_p8 = por %p350_p7, %p349_p6 }
  0x14   :  { %p352_p9 = pnand %p351_p8, %p345_p5 }
  0x16   :  { %355 = shalt.err (!%p352_p9)
}
  0x17   :  { %21 = dma.hbm_to_vmem [thread:$0]  %s435_s0, 128, %s19_s26, [#allocation3]  }
  0x18   :  { %s364_s7 = scalar_lea.vmem %s42_s28, 2048  ;;  %p369_p11 = scmp.lt.s32.totalorder %s42_s28, %s42_s28 }
  0x19   :  { %p365_p10 = scmp.ne.s32.totalorder %s42_s28, %s364_s7  ;;  %p370_p12 = scmp.lt.s32.totalorder %s364_s7, %s364_s7 }
  0x1b   :  { %p371_p13 = por %p370_p12, %p369_p11 }
  0x1d   :  { %p372_p0 = pnand %p371_p13, %p365_p10 }
  0x1f   :  { %375 = shalt.err (!%p372_p0)
}
  0x20   :  { %47 = dma.hbm_to_vmem [thread:$0]  %s438_s3, 2048, %s42_s28, [#allocation5], %s381_s21, %s381_s21, %s382_s22  }
  0x21   :  { %376 = dma.done.wait [#allocation3], 128  }
  0x22   :  { %377 = vsyncadd [#allocation3], 4294967168 }
  0x23   :  { %378 = dma.done.wait [#allocation5], 2304  }
  0x24   :  { %379 = vsyncadd [#allocation5], 4294964992  ;;  %v385_v0 = vmov 0.0   ;;  %vm386_vm0 = vmmov 0   ;;  %v61_v1 = vld [vmem:[#allocation4 + $0x8] sm:$0xff]  ;;  %v60_v2 = vld [vmem:[#allocation4] sm:$0xff] }
  0x25   :  { %267 = vmatprep.subr.mxu0 %v385_v0  ;;  %271 = vmatprep.mubr.msk.f32.mxu0 %vm386_vm0, %v385_v0  ;;  %v59_v3 = vld [vmem:[#allocation2] sm:$0xff]  ;;  %vm69_vm1 = vcmask 130048   ;;  %v159_v4 = vld [vmem:[#allocation6 + $0x78] sm:$0xff]  ;;  %v158_v5 = vld [vmem:[#allocation6 + $0x70] sm:$0xff] }
  0x26   :  { %274 = vmatprep.subr.mxu1 %v385_v0  ;;  %306 = vmatprep.mubr.msk.f32.mxu1 %vm386_vm0, %v385_v0  ;;  %v157_v6 = vld [vmem:[#allocation6 + $0x68] sm:$0xff]  ;;  %v156_v7 = vld [vmem:[#allocation6 + $0x60] sm:$0xff]  ;;  %v155_v8 = vld [vmem:[#allocation6 + $0x58] sm:$0xff] }
  0x27   :  { %268 = vmatpush3.msra.mxu0 %v61_v1  ;;  %275 = vmatpush3.msra.mxu1 %v159_v4  ;;  %v154_v9 = vld [vmem:[#allocation6 + $0x50] sm:$0xff]  ;;  %v153_v10 = vld [vmem:[#allocation6 + $0x48] sm:$0xff]  ;;  %v152_v11 = vld [vmem:[#allocation6 + $0x40] sm:$0xff] }
  0x28   :  { %269 = vmatprep.subr.mxu0 %v385_v0  ;;  %276 = vmatprep.subr.mxu1 %v385_v0  ;;  %v151_v12 = vld [vmem:[#allocation6 + $0x38] sm:$0xff]  ;;  %v150_v13 = vld [vmem:[#allocation6 + $0x30] sm:$0xff]  ;;  %v149_v14 = vld [vmem:[#allocation6 + $0x28] sm:$0xff] }
  0x29   :  { %270 = vmatpush3.msra.mxu0 %v60_v2  ;;  %277 = vmatpush3.msra.mxu1 %v158_v5  ;;  %v148_v15 = vld [vmem:[#allocation6 + $0x20] sm:$0xff]  ;;  %v147_v16 = vld [vmem:[#allocation6 + $0x18] sm:$0xff]  ;;  %v146_v17 = vld [vmem:[#allocation6 + $0x10] sm:$0xff] }
  0x2a   :  { %272 = vmatmul.mubr.msk.f32.vlgmr.msra.gmra.mxu0 %vm69_vm1, %v59_v3  ;;  %278 = vmatprep.subr.mxu1 %v385_v0  ;;  %v145_v18 = vld [vmem:[#allocation6 + $0x8] sm:$0xff]  ;;  %v144_v19 = vld [vmem:[#allocation6] sm:$0xff] }
  0x2b   :  { %279 = vmatpush3.msra.mxu1 %v157_v6  ;;  %v244_v20 = vld [vmem:[%s437_s2] ss:$0 sm:$0xff] }
  0x2c   :  { %280 = vmatprep.subr.mxu1 %v385_v0  ;;  %v246_v25 = vld [vmem:[%s439_s4] ss:$0 sm:$0xff] }
  0x2d   :  { %281 = vmatpush3.msra.mxu1 %v156_v7 }
  0x2e   :  { %282 = vmatprep.subr.mxu1 %v385_v0 }
  0x2f   :  { %283 = vmatpush3.msra.mxu1 %v155_v8 }
  0x30   :  { %284 = vmatprep.subr.mxu1 %v385_v0 }
  0x31   :  { %285 = vmatpush3.msra.mxu1 %v154_v9 }
  0x32   :  { %286 = vmatprep.subr.mxu1 %v385_v0 }
  0x33   :  { %287 = vmatpush3.msra.mxu1 %v153_v10 }
  0x34   :  { %288 = vmatprep.subr.mxu1 %v385_v0 }
  0x35   :  { %289 = vmatpush3.msra.mxu1 %v152_v11 }
  0x36   :  { %290 = vmatprep.subr.mxu1 %v385_v0 }
  0x37   :  { %291 = vmatpush3.msra.mxu1 %v151_v12 }
  0x38   :  { %292 = vmatprep.subr.mxu1 %v385_v0 }
  0x39   :  { %293 = vmatpush3.msra.mxu1 %v150_v13 }
  0x3a   :  { %294 = vmatprep.subr.mxu1 %v385_v0 }
  0x3b   :  { %295 = vmatpush3.msra.mxu1 %v149_v14 }
  0x3c   :  { %296 = vmatprep.subr.mxu1 %v385_v0 }
  0x3d   :  { %297 = vmatpush3.msra.mxu1 %v148_v15 }
  0x3e   :  { %298 = vmatprep.subr.mxu1 %v385_v0 }
  0x3f   :  { %299 = vmatpush3.msra.mxu1 %v147_v16 }
  0x40   :  { %300 = vmatprep.subr.mxu1 %v385_v0 }
  0x41   :  { %301 = vmatpush3.msra.mxu1 %v146_v17 }
  0x42   :  { %302 = vmatprep.subr.mxu1 %v385_v0 }
  0x43   :  { %303 = vmatpush3.msra.mxu1 %v145_v18 }
  0x44   :  { %304 = vmatprep.subr.mxu1 %v385_v0 }
  0x45   :  { %305 = vmatpush3.msra.mxu1 %v144_v19 }
  0xea   :  { %v139_v21 = vpop.f32.mrf.mxu0 }
  0xeb   :  { %v140_v22 = vadd.f32 %v244_v20, %v139_v21 }
  0xec   :  { %v273_v23 = vpop.f32.mrf.mxu0 }
  0xed   :  { %v143_v24 = vmax.f32 %v140_v22, 0.0 }
  0xef   :  { %307 = vmatmul.mubr.f32.vlgmr.msra.gmra.mxu1 %v143_v24 }
 0x1af   :  { %v233_v26 = vpop.f32.mrf.mxu1 }
 0x1b0   :  { %v234_v27 = vadd.f32 %v246_v25, %v233_v26 }
 0x1b1   :  { %v308_v28 = vpop.f32.mrf.mxu1 }
 0x1b2   :  { %237 = vst [vmem:[%s440_s5] sm:$0xff] %v234_v27 }
 0x1b3   :  { %242 = vsyncpa [#allocation3], 1 }
 0x1b4   :  { %243 = vsyncpa [#allocation5], 1 }

</bundles_post_ra>
